<compile_context>
chip_gen: v5e
topology: v5e:2x2
jax: 0.10.0
libtpu: 0.0.40
codegen_flags: <defaults>
</compile_context>

<pallas_src>
import jax
import jax.numpy as jnp
import numpy as np
from jax import lax
from jax.experimental import pallas as pl
from jax.experimental.pallas import tpu as pltpu

_LANE = 128


def _round_up(x, m):
    return ((x + m - 1) // m) * m


# --------------------------------------------------------------------------
# Pass 1: fused GCN (+ReLU) and GRU input projection for a block of time steps.
#   x_ref    : (rows, N*F)     bf16   rows ordered (t, b), node features on lanes
#   wgcn_ref : (N*F, N*Hg)     bf16   kron(A_norm^T, Wg)  -- whole GCN in one matmul
#   bg_ref   : (1, N*Hg)       f32    GCN bias tiled per node
#   wi_ref   : (N*Hg, 3*Hp)    bf16   fused, 128-padded [W_ir | W_iz | W_in]
#   bi_ref   : (1, 3*Hp)       f32    fused, 128-padded input biases
#   gi_ref   : (rows, 3*Hp)    f32    per-timestep fused input gates (lane-dense)
# --------------------------------------------------------------------------
def _gcn_input_proj_kernel(x_ref, wgcn_ref, bg_ref, wi_ref, bi_ref, gi_ref):
    cd = wgcn_ref.dtype                                     # MXU compute dtype (bf16)

    # relu( X2d @ kron(A^T, Wg) + bg )  -- one matmul, no structural zeros, no relayout.
    gcn = jnp.dot(x_ref[...], wgcn_ref[...],
                  preferred_element_type=jnp.float32)       # (rows, N*Hg) f32
    gcn = jnp.maximum(gcn + bg_ref[...], 0.0)               # ReLU on the VPU, f32

    # Fused input projection for all three gates (128-padded per gate -> lane-dense out).
    gi_ref[...] = jnp.dot(gcn.astype(cd), wi_ref[...],
                          preferred_element_type=jnp.float32) + bi_ref[...]


# --------------------------------------------------------------------------
# Pass 2: sequential GRU recurrence, streamed over time chunks.
#   gi_ref    : (tc, B, 3*Hp)  f32   input gates for this time chunk [r|z|n]
#   wh_ref    : (Hp, 3*Hp)     bf16  fused, 128-padded [W_hr | W_hz | W_hn]
#   bh_ref    : (1, 3*Hp)      f32
#   h_out_ref : (1, B, Hp)     f32   final hidden state (lane-dense; sliced to H outside)
#   h_scratch : (B, Hp)        f32   VMEM carry across grid steps (chunks)
# --------------------------------------------------------------------------
def _gru_recurrence_kernel(gi_ref, wh_ref, bh_ref, h_out_ref, h_scratch):
    Hp = wh_ref.shape[0]

    @pl.when(pl.program_id(0) == 0)
    def _():
        h_scratch[...] = jnp.zeros_like(h_scratch)

    wh = wh_ref[...]                                        # (Hp, 3Hp) bf16, loaded once
    bh = bh_ref[...]                                        # (1, 3Hp)  f32

    # TODO(synk): keep Wh resident in MXU weight registers across steps via
    # pltpu.matmul_push_rhs / matmul_acc_lhs / matmul_pop once that path is validated;
    # for now the loop-invariant `wh` value lets the compiler re-stage it cheaply.
    def step(t, h):
        gi = gi_ref[t]                                      # (B, 3Hp) f32
        gh = jnp.dot(h.astype(wh.dtype), wh,
                     preferred_element_type=jnp.float32) + bh
        rz = jax.nn.sigmoid(gi[:, :2 * Hp] + gh[:, :2 * Hp])   # one EUP push for r and z
        r = rz[:, :Hp]                                      # 128-aligned slices
        z = rz[:, Hp:]
        n = jnp.tanh(gi[:, 2 * Hp:] + r * gh[:, 2 * Hp:])
        return (1.0 - z) * n + z * h

    tc = gi_ref.shape[0]                                    # chunk length (<= 8 by design)
    h = lax.fori_loop(0, tc, step, h_scratch[...], unroll=True)
    h_scratch[...] = h

    @pl.when(pl.program_id(0) == pl.num_programs(0) - 1)
    def _():
        h_out_ref[...] = h[None]


# --------------------------------------------------------------------------
# Spec helpers
# --------------------------------------------------------------------------
def _weight_spec(shape, single_buffer):
    """BlockSpec for a grid-invariant operand; request single-buffering when available."""
    index_map = lambda i: (0,) * len(shape)
    if single_buffer and hasattr(pl, "Buffered"):
        try:
            return pl.BlockSpec(shape, index_map, pipeline_mode=pl.Buffered(1))
        except Exception:   # older jax: no pipeline_mode kwarg / Buffered(1) rejected
            pass
    return pl.BlockSpec(shape, index_map)


def _choose_t_block(T, B, x_row_bytes, gi_row_bytes, budget_bytes=8 << 20):
    """VMEM-budget-driven time-block size for pass 1 (v7x-safe), preferring
    8-row sublane alignment and >= 2 blocks (so 'parallel' can megacore-shard)."""
    divs = [t for t in range(1, T + 1) if T % t == 0]
    per_t = 2 * B * (x_row_bytes + gi_row_bytes)            # double-buffered in + out tiles
    fits = [t for t in divs if t * per_t <= budget_bytes] or [min(divs)]

    def pref(t):
        rows_aligned = ((t * B) % 8 == 0) or (t == T)
        multi_block = (T // t) >= 2
        return (rows_aligned, multi_block, t)

    return max(fits, key=pref)


def _choose_t_chunk(T, cap=8):
    """Largest divisor of T not exceeding `cap` (caps in-kernel unroll for pass 2)."""
    return max(t for t in range(1, min(T, cap) + 1) if T % t == 0)


# --------------------------------------------------------------------------
# One-time parameter prep (model-build time, outside the traced forward).
# --------------------------------------------------------------------------
def _fuse_and_pad_gates(ws, bs, H, Hp, in_pad=None):
    d_in = ws[0].shape[0]
    in_pad = d_in if in_pad is None else in_pad
    w = jnp.zeros((in_pad, 3 * Hp), jnp.float32)
    b = jnp.zeros((1, 3 * Hp), jnp.float32)
    for g, (wg_, bg_) in enumerate(zip(ws, bs)):
        w = w.at[:d_in, g * Hp:g * Hp + H].set(wg_)
        b = b.at[:, g * Hp:g * Hp + H].set(bg_)
    return w, b


def prepare_params(params, a_norm, num_nodes, *, mxu_dtype=jnp.bfloat16, lane=_LANE):
    """Build-time fusion/padding/casting of all weights (hoisted out of the forward)."""
    N = num_nodes
    H = params["whr"].shape[0]
    Hp = _round_up(H, lane)

    # Whole GCN folded into one weight: out[n*Hg+h] = sum_{m,f} x[m*F+f] * A[n,m] * Wg[f,h]
    w_gcn = jnp.kron(a_norm.T, params["wg"]).astype(mxu_dtype)          # (N*F, N*Hg)
    bg = jnp.tile(params["bg"].astype(jnp.float32), (1, N))             # (1, N*Hg)
    # NOTE: on v6e, padding the N*Hg contraction toward a 256 multiple would further
    # fill the 2x256^2 MXU; skipped at these sizes.

    wi, bi = _fuse_and_pad_gates(
        [params["wir"], params["wiz"], params["win"]],
        [params["bir"], params["biz"], params["bin"]], H, Hp)
    wh, bh = _fuse_and_pad_gates(
        [params["whr"], params["whz"], params["whn"]],
        [params["bhr"], params["bhz"], params["bhn"]], H, Hp, in_pad=Hp)

    return {
        "w_gcn": w_gcn, "bg": bg,
        "wi": wi.astype(mxu_dtype), "bi": bi,
        "wh": wh.astype(mxu_dtype), "bh": bh,
        "H": H, "Hp": Hp,
    }


# --------------------------------------------------------------------------
# Pallas passes
# --------------------------------------------------------------------------
def _gcn_pass(x2d, prep, t_block, num_blk, B, single_buffer):
    TB, NF = x2d.shape
    H3 = prep["wi"].shape[1]
    rows = t_block * B
    return pl.pallas_call(
        _gcn_input_proj_kernel,
        out_shape=jax.ShapeDtypeStruct((TB, H3), jnp.float32),
        grid_spec=pltpu.PrefetchScalarGridSpec(
            num_scalar_prefetch=0,
            grid=(num_blk,),
            in_specs=[
                pl.BlockSpec((rows, NF), lambda i: (i, 0)),
                _weight_spec(prep["w_gcn"].shape, single_buffer),
                _weight_spec(prep["bg"].shape, single_buffer),
                _weight_spec(prep["wi"].shape, single_buffer),
                _weight_spec(prep["bi"].shape, single_buffer),
            ],
            out_specs=pl.BlockSpec((rows, H3), lambda i: (i, 0)),
        ),
        compiler_params=pltpu.CompilerParams(
            dimension_semantics=("parallel",),          # megacore-shardable on v7x
            vmem_limit_bytes=32 * 1024 * 1024,
        ),
    )(x2d, prep["w_gcn"], prep["bg"], prep["wi"], prep["bi"])


def _gru_pass(gi3, prep, t_chunk, B, single_buffer):
    T = gi3.shape[0]
    Hp = prep["Hp"]
    H3 = prep["wh"].shape[1]
    return pl.pallas_call(
        _gru_recurrence_kernel,
        out_shape=jax.ShapeDtypeStruct((1, B, Hp), jnp.float32),
        grid_spec=pltpu.PrefetchScalarGridSpec(
            num_scalar_prefetch=0,
            grid=(T // t_chunk,),
            in_specs=[
                pl.BlockSpec((t_chunk, B, H3), lambda i: (i, 0, 0)),
                _weight_spec(prep["wh"].shape, single_buffer),
                _weight_spec(prep["bh"].shape, single_buffer),
            ],
            out_specs=pl.BlockSpec((1, B, Hp), lambda i: (0, 0, 0)),
            scratch_shapes=[pltpu.VMEM((B, Hp), jnp.float32)],   # hidden-state carry
        ),
        compiler_params=pltpu.CompilerParams(
            dimension_semantics=("arbitrary",),         # recurrence is sequential
            vmem_limit_bytes=32 * 1024 * 1024,
        ),
    )(gi3, prep["wh"], prep["bh"])


def grn_encoder_forward(x, prep, *, vmem_budget_bytes=8 << 20):
    """x: (B, T, N, F) float32 ; prep: output of prepare_params()."""
    B, T, N, F = x.shape
    H, Hp = prep["H"], prep["Hp"]
    NF = N * F
    H3 = 3 * Hp
    mxu_dtype = prep["w_gcn"].dtype

    # Layout plumbing (wrapper side): time-major (t, b) rows, lane dimension = N*F.
    x2d = jnp.transpose(x, (1, 0, 2, 3)).reshape(T * B, NF).astype(mxu_dtype)

    t_block = _choose_t_block(T, B,
                              x_row_bytes=NF * x2d.dtype.itemsize,
                              gi_row_bytes=H3 * 4,
                              budget_bytes=vmem_budget_bytes)
    num_blk = T // t_block

    # Pass 1: GCN + fused input projection (time-parallel). Try single-buffered
    # invariant weights; fall back to default double-buffering if unsupported.
    try:
        gi = _gcn_pass(x2d, prep, t_block, num_blk, B, single_buffer=True)
        single_buffer = True
    except Exception:
        gi = _gcn_pass(x2d, prep, t_block, num_blk, B, single_buffer=False)
        single_buffer = False

    # Pass 2: minimal sequential GRU recurrence, gi streamed in time chunks.
    # (At very small T the two calls could be fused into one kernel to avoid the gi
    #  HBM round trip; kept separate so pass 1 can megacore-shard at scale.)
    gi3 = gi.reshape(T, B, H3)                              # free, contiguous reshape
    t_chunk = _choose_t_chunk(T)
    hidden_p = _gru_pass(gi3, prep, t_chunk, B, single_buffer)

    return hidden_p[:, :, :H]                               # drop the 128-padding lanes


# --------------------------------------------------------------------------
# Glue: dense GCN normalization (matches torch_geometric GCNConv defaults:
# add self loops + symmetric D^{-1/2} (A+I) D^{-1/2} normalization).
# --------------------------------------------------------------------------
def build_normalized_adjacency(edge_index, num_nodes):
    src = np.asarray(edge_index[0])
    dst = np.asarray(edge_index[1])
    A = np.zeros((num_nodes, num_nodes), dtype=np.float32)
    A[src, dst] = 1.0
    A = A + np.eye(num_nodes, dtype=np.float32)             # add self loops
    deg = A.sum(axis=0)                                     # in-degree (per target)
    dinv = 1.0 / np.sqrt(np.maximum(deg, 1e-12))
    # out[i] = sum_j A[j, i] * dinv[i] * dinv[j] * x[j]  ->  M = D^-1/2 A^T D^-1/2
    M = dinv[:, None] * A.T * dinv[None, :]
    return jnp.asarray(M, dtype=jnp.float32)


def init_params(key, input_dim, gcn_hidden_dim, gru_hidden_dim, num_nodes):
    d_in = num_nodes * gcn_hidden_dim
    ks = jax.random.split(key, 16)
    s = 0.1
    return {
        "wg":  s * jax.random.normal(ks[0], (input_dim, gcn_hidden_dim), jnp.float32),
        "bg":  s * jax.random.normal(ks[1], (1, gcn_hidden_dim), jnp.float32),
        "wir": s * jax.random.normal(ks[2], (d_in, gru_hidden_dim), jnp.float32),
        "wiz": s * jax.random.normal(ks[3], (d_in, gru_hidden_dim), jnp.float32),
        "win": s * jax.random.normal(ks[4], (d_in, gru_hidden_dim), jnp.float32),
        "whr": s * jax.random.normal(ks[5], (gru_hidden_dim, gru_hidden_dim), jnp.float32),
        "whz": s * jax.random.normal(ks[6], (gru_hidden_dim, gru_hidden_dim), jnp.float32),
        "whn": s * jax.random.normal(ks[7], (gru_hidden_dim, gru_hidden_dim), jnp.float32),
        "bir": s * jax.random.normal(ks[8], (1, gru_hidden_dim), jnp.float32),
        "biz": s * jax.random.normal(ks[9], (1, gru_hidden_dim), jnp.float32),
        "bin": s * jax.random.normal(ks[10], (1, gru_hidden_dim), jnp.float32),
        "bhr": s * jax.random.normal(ks[11], (1, gru_hidden_dim), jnp.float32),
        "bhz": s * jax.random.normal(ks[12], (1, gru_hidden_dim), jnp.float32),
        "bhn": s * jax.random.normal(ks[13], (1, gru_hidden_dim), jnp.float32),
    }


def reference_forward(x, a_norm, params):
    """Pure-JAX f32 reference of the PyTorch module's math."""
    B, T, N, F = x.shape
    H = params["whr"].shape[0]
    xw = jnp.einsum("btnf,fh->btnh", x, params["wg"])
    gcn = jax.nn.relu(jnp.einsum("nm,btmh->btnh", a_norm, xw) + params["bg"])
    flat = gcn.reshape(B, T, -1)
    h = jnp.zeros((B, H), jnp.float32)
    for t in range(T):
        xt = flat[:, t]
        r = jax.nn.sigmoid(xt @ params["wir"] + params["bir"] + h @ params["whr"] + params["bhr"])
        z = jax.nn.sigmoid(xt @ params["wiz"] + params["biz"] + h @ params["whz"] + params["bhz"])
        n = jnp.tanh(xt @ params["win"] + params["bin"] + r * (h @ params["whn"] + params["bhn"]))
        h = (1.0 - z) * n + z * h
    return h[None, :, :]


if __name__ == "__main__":
    B, T, N, F = 2, 8, 4, 4          # batch, time, nodes (stocks), features per node
    GCN_H, GRU_H = 8, 32

    key = jax.random.PRNGKey(0)
    k_x, k_p = jax.random.split(key)

    x = jax.random.normal(k_x, (B, T, N, F), jnp.float32)
    # ring graph over the 4 nodes, both directions
    edge_index = np.array(
        [[0, 1, 1, 2, 2, 3, 3, 0],
         [1, 0, 2, 1, 3, 2, 0, 3]], dtype=np.int32)

    a_norm = build_normalized_adjacency(edge_index, N)
    params = init_params(k_p, F, GCN_H, GRU_H, N)
    prep = prepare_params(params, a_norm, N)     # one-time build-time weight prep

    hidden = jax.block_until_ready(grn_encoder_forward(x, prep))
    ref = jax.block_until_ready(reference_forward(x, a_norm, params))

    # bf16 MXU operands (f32 accumulation / gate math) -> relaxed tolerance vs f32 ref.
    np.testing.assert_allclose(np.asarray(hidden), np.asarray(ref), rtol=2e-2, atol=2e-2)

    assert hidden.shape == (1, B, GRU_H)
    print("KERNEL_OK")
</pallas_src>

<mosaic_0001>
module attributes {stable_mosaic.version = 11 : i64} {
  func.func @_gcn_input_proj_kernel(%arg0: i32, %arg1: memref<8x16xbf16, #tpu.memory_space<vmem>>, %arg2: memref<16x32xbf16, #tpu.memory_space<vmem>>, %arg3: memref<1x32xf32, #tpu.memory_space<vmem>>, %arg4: memref<32x384xbf16, #tpu.memory_space<vmem>>, %arg5: memref<1x384xf32, #tpu.memory_space<vmem>>, %arg6: memref<8x384xf32, #tpu.memory_space<vmem>>) attributes {dimension_semantics = [#tpu.dimension_semantics<parallel>], iteration_bounds = array<i64: 2>, scalar_prefetch = 0 : i64, scratch_operands = 0 : i64, tpu.core_type = #tpu.core_type<tc>, window_params = [{transform_indices = @transform_0, window_bounds = array<i64: 8, 16>}, {pipeline_mode = #tpu.pipeline_mode<synchronous>, transform_indices = @transform_1, window_bounds = array<i64: 16, 32>}, {pipeline_mode = #tpu.pipeline_mode<synchronous>, transform_indices = @transform_2, window_bounds = array<i64: 1, 32>}, {pipeline_mode = #tpu.pipeline_mode<synchronous>, transform_indices = @transform_3, window_bounds = array<i64: 32, 384>}, {pipeline_mode = #tpu.pipeline_mode<synchronous>, transform_indices = @transform_4, window_bounds = array<i64: 1, 384>}, {transform_indices = @transform_5, window_bounds = array<i64: 8, 384>}]} {
    %c0 = arith.constant 0 : index
    %c0_0 = arith.constant 0 : index
    %0 = vector.load %arg1[%c0, %c0_0] : memref<8x16xbf16, #tpu.memory_space<vmem>>, vector<8x16xbf16>
    %c0_1 = arith.constant 0 : index
    %c0_2 = arith.constant 0 : index
    %1 = vector.load %arg2[%c0_1, %c0_2] : memref<16x32xbf16, #tpu.memory_space<vmem>>, vector<16x32xbf16>
    %cst = arith.constant dense<0.000000e+00> : vector<8x32xf32>
    %2 = tpu.matmul %0, %1, %cst {dimension_numbers = #tpu.dot_dimension_numbers<[1], [0], [0], [1], [0, 0, 1, 1], [], []>} : vector<8x16xbf16>, vector<16x32xbf16>, vector<8x32xf32> -> vector<8x32xf32>
    %c0_3 = arith.constant 0 : index
    %c0_4 = arith.constant 0 : index
    %3 = vector.load %arg3[%c0_3, %c0_4] : memref<1x32xf32, #tpu.memory_space<vmem>>, vector<1x32xf32>
    %4 = vector.broadcast %3 : vector<1x32xf32> to vector<8x32xf32>
    %5 = arith.addf %2, %4 : vector<8x32xf32>
    %cst_5 = arith.constant 0.000000e+00 : f32
    %6 = vector.broadcast %cst_5 : f32 to vector<8x32xf32>
    %7 = arith.maximumf %5, %6 : vector<8x32xf32>
    %8 = arith.truncf %7 : vector<8x32xf32> to vector<8x32xbf16>
    %c0_6 = arith.constant 0 : index
    %c0_7 = arith.constant 0 : index
    %9 = vector.load %arg4[%c0_6, %c0_7] : memref<32x384xbf16, #tpu.memory_space<vmem>>, vector<32x384xbf16>
    %cst_8 = arith.constant dense<0.000000e+00> : vector<8x384xf32>
    %10 = tpu.matmul %8, %9, %cst_8 {dimension_numbers = #tpu.dot_dimension_numbers<[1], [0], [0], [1], [0, 0, 1, 1], [], []>} : vector<8x32xbf16>, vector<32x384xbf16>, vector<8x384xf32> -> vector<8x384xf32>
    %c0_9 = arith.constant 0 : index
    %c0_10 = arith.constant 0 : index
    %11 = vector.load %arg5[%c0_9, %c0_10] : memref<1x384xf32, #tpu.memory_space<vmem>>, vector<1x384xf32>
    %12 = vector.broadcast %11 : vector<1x384xf32> to vector<8x384xf32>
    %13 = arith.addf %10, %12 : vector<8x384xf32>
    %c0_11 = arith.constant 0 : index
    %c0_12 = arith.constant 0 : index
    %14 = vector.load %arg6[%c0_11, %c0_12] : memref<8x384xf32, #tpu.memory_space<vmem>>, vector<8x384xf32>
    tpu.vector_store %arg6[%c0_11, %c0_12], %13 {strides = array<i32>} : memref<8x384xf32, #tpu.memory_space<vmem>>, vector<8x384xf32>,
    return
  }
  func.func @transform_0(%arg0: i32) -> (i32, i32) {
    %c0_i32 = arith.constant 0 : i32
    %c0_i32_0 = arith.constant 0 : i32
    return %arg0, %c0_i32 : i32, i32
  }
  func.func @transform_1(%arg0: i32) -> (i32, i32) {
    %c0_i32 = arith.constant 0 : i32
    %c0_i32_0 = arith.constant 0 : i32
    %c0_i32_1 = arith.constant 0 : i32
    return %c0_i32, %c0_i32_0 : i32, i32
  }
  func.func @transform_2(%arg0: i32) -> (i32, i32) {
    %c0_i32 = arith.constant 0 : i32
    %c0_i32_0 = arith.constant 0 : i32
    %c0_i32_1 = arith.constant 0 : i32
    return %c0_i32, %c0_i32_0 : i32, i32
  }
  func.func @transform_3(%arg0: i32) -> (i32, i32) {
    %c0_i32 = arith.constant 0 : i32
    %c0_i32_0 = arith.constant 0 : i32
    %c0_i32_1 = arith.constant 0 : i32
    return %c0_i32, %c0_i32_0 : i32, i32
  }
  func.func @transform_4(%arg0: i32) -> (i32, i32) {
    %c0_i32 = arith.constant 0 : i32
    %c0_i32_0 = arith.constant 0 : i32
    %c0_i32_1 = arith.constant 0 : i32
    return %c0_i32, %c0_i32_0 : i32, i32
  }
  func.func @transform_5(%arg0: i32) -> (i32, i32) {
    %c0_i32 = arith.constant 0 : i32
    %c0_i32_0 = arith.constant 0 : i32
    return %arg0, %c0_i32 : i32, i32
  }
}

module attributes {stable_mosaic.version = 11 : i64} {
  func.func @_gcn_input_proj_kernel(%arg0: i32, %arg1: memref<8x16xbf16, #tpu.memory_space<vmem>>, %arg2: memref<16x32xbf16, #tpu.memory_space<vmem>>, %arg3: memref<1x32xf32, #tpu.memory_space<vmem>>, %arg4: memref<32x384xbf16, #tpu.memory_space<vmem>>, %arg5: memref<1x384xf32, #tpu.memory_space<vmem>>, %arg6: memref<8x384xf32, #tpu.memory_space<vmem>>) attributes {dimension_semantics = [#tpu.dimension_semantics<parallel>], iteration_bounds = array<i64: 2>, scalar_prefetch = 0 : i64, scratch_operands = 0 : i64, tpu.core_type = #tpu.core_type<tc>, window_params = [{transform_indices = @transform_0, window_bounds = array<i64: 8, 16>}, {pipeline_mode = #tpu.pipeline_mode<synchronous>, transform_indices = @transform_1, window_bounds = array<i64: 16, 32>}, {pipeline_mode = #tpu.pipeline_mode<synchronous>, transform_indices = @transform_2, window_bounds = array<i64: 1, 32>}, {pipeline_mode = #tpu.pipeline_mode<synchronous>, transform_indices = @transform_3, window_bounds = array<i64: 32, 384>}, {pipeline_mode = #tpu.pipeline_mode<synchronous>, transform_indices = @transform_4, window_bounds = array<i64: 1, 384>}, {transform_indices = @transform_5, window_bounds = array<i64: 8, 384>}]} {
    %c0 = arith.constant 0 : index
    %c0_0 = arith.constant 0 : index
    %0 = vector.load %arg1[%c0, %c0_0] : memref<8x16xbf16, #tpu.memory_space<vmem>>, vector<8x16xbf16>
    %c0_1 = arith.constant 0 : index
    %c0_2 = arith.constant 0 : index
    %1 = vector.load %arg2[%c0_1, %c0_2] : memref<16x32xbf16, #tpu.memory_space<vmem>>, vector<16x32xbf16>
    %cst = arith.constant dense<0.000000e+00> : vector<8x32xf32>
    %2 = tpu.matmul %0, %1, %cst {dimension_numbers = #tpu.dot_dimension_numbers<[1], [0], [0], [1], [0, 0, 1, 1], [], []>} : vector<8x16xbf16>, vector<16x32xbf16>, vector<8x32xf32> -> vector<8x32xf32>
    %c0_3 = arith.constant 0 : index
    %c0_4 = arith.constant 0 : index
    %3 = vector.load %arg3[%c0_3, %c0_4] : memref<1x32xf32, #tpu.memory_space<vmem>>, vector<1x32xf32>
    %4 = vector.broadcast %3 : vector<1x32xf32> to vector<8x32xf32>
    %5 = arith.addf %2, %4 : vector<8x32xf32>
    %cst_5 = arith.constant 0.000000e+00 : f32
    %6 = vector.broadcast %cst_5 : f32 to vector<8x32xf32>
    %7 = arith.maximumf %5, %6 : vector<8x32xf32>
    %8 = arith.truncf %7 : vector<8x32xf32> to vector<8x32xbf16>
    %c0_6 = arith.constant 0 : index
    %c0_7 = arith.constant 0 : index
    %9 = vector.load %arg4[%c0_6, %c0_7] : memref<32x384xbf16, #tpu.memory_space<vmem>>, vector<32x384xbf16>
    %cst_8 = arith.constant dense<0.000000e+00> : vector<8x384xf32>
    %10 = tpu.matmul %8, %9, %cst_8 {dimension_numbers = #tpu.dot_dimension_numbers<[1], [0], [0], [1], [0, 0, 1, 1], [], []>} : vector<8x32xbf16>, vector<32x384xbf16>, vector<8x384xf32> -> vector<8x384xf32>
    %c0_9 = arith.constant 0 : index
    %c0_10 = arith.constant 0 : index
    %11 = vector.load %arg5[%c0_9, %c0_10] : memref<1x384xf32, #tpu.memory_space<vmem>>, vector<1x384xf32>
    %12 = vector.broadcast %11 : vector<1x384xf32> to vector<8x384xf32>
    %13 = arith.addf %10, %12 : vector<8x384xf32>
    %c0_11 = arith.constant 0 : index
    %c0_12 = arith.constant 0 : index
    %14 = vector.load %arg6[%c0_11, %c0_12] : memref<8x384xf32, #tpu.memory_space<vmem>>, vector<8x384xf32>
    tpu.vector_store %arg6[%c0_11, %c0_12], %13 {strides = array<i32>} : memref<8x384xf32, #tpu.memory_space<vmem>>, vector<8x384xf32>,
    return
  }
  func.func @transform_0(%arg0: i32) -> (i32, i32) {
    %c0_i32 = arith.constant 0 : i32
    %c0_i32_0 = arith.constant 0 : i32
    return %arg0, %c0_i32 : i32, i32
  }
  func.func @transform_1(%arg0: i32) -> (i32, i32) {
    %c0_i32 = arith.constant 0 : i32
    %c0_i32_0 = arith.constant 0 : i32
    %c0_i32_1 = arith.constant 0 : i32
    return %c0_i32, %c0_i32_0 : i32, i32
  }
  func.func @transform_2(%arg0: i32) -> (i32, i32) {
    %c0_i32 = arith.constant 0 : i32
    %c0_i32_0 = arith.constant 0 : i32
    %c0_i32_1 = arith.constant 0 : i32
    return %c0_i32, %c0_i32_0 : i32, i32
  }
  func.func @transform_3(%arg0: i32) -> (i32, i32) {
    %c0_i32 = arith.constant 0 : i32
    %c0_i32_0 = arith.constant 0 : i32
    %c0_i32_1 = arith.constant 0 : i32
    return %c0_i32, %c0_i32_0 : i32, i32
  }
  func.func @transform_4(%arg0: i32) -> (i32, i32) {
    %c0_i32 = arith.constant 0 : i32
    %c0_i32_0 = arith.constant 0 : i32
    %c0_i32_1 = arith.constant 0 : i32
    return %c0_i32, %c0_i32_0 : i32, i32
  }
  func.func @transform_5(%arg0: i32) -> (i32, i32) {
    %c0_i32 = arith.constant 0 : i32
    %c0_i32_0 = arith.constant 0 : i32
    return %arg0, %c0_i32 : i32, i32
  }
}

</mosaic_0001>

<bundles_post_ra>
// kernel: tpu_custom_call.1
= control target key start
LH: loop header
LB: loop body
LE: loop exit
PB: predicated region body
PF: predicated region fallthrough
CT: control target
= control target key end

     0   :  { %10 = vsyncpa [#allocation3], 0  ;;  %s1065_s0 = inlined_call_operand.hbm [shape: bf16[16,16], index: 0, kind: input, shape index: {}]   ;;  %s1066_s1 = inlined_call_operand.hbm [shape: bf16[16,32], index: 1, kind: input, shape index: {}]   ;;  %s1067_s2 = inlined_call_operand.hbm [shape: f32[1,32], index: 2, kind: input, shape index: {}]   ;;  %s1068_s3 = inlined_call_operand.hbm [shape: bf16[32,384], index: 3, kind: input, shape index: {}]   ;;  %s1069_s4 = inlined_call_operand.vmem [shape: f32[1,384], index: 4, kind: input, shape index: {}]   ;;  %s1070_s5 = inlined_call_operand.hbm [shape: f32[16,384], index: 5, kind: output, shape index: {}]  }
   0x1   :  { %12 = vsyncpa [#allocation3 + $0x1], 0 }
   0x2   :  { %13 = vsyncpa [#allocation6], 0 }
   0x3   :  { %14 = vsyncpa [#allocation9], 0 }
   0x4   :  { %15 = vsyncpa [#allocation4], 0 }
   0x5   :  { %17 = vsyncpa [#allocation4 + $0x1], 0  ;;  %s905_s18 = smov 0   ;;  %s907_s19 = smov 0  }
   0x6   :  { %s909_s20 = smov 0   ;;  %s911_s21 = smov 0  }
   0x7 LB: > { %s175_s24 = sshll.u32 %s1066_s1, 4  ;;  %s929_s25 = sadd.s32 4294967295, %s866_s21   ;;  %s866_s21 = sphi %s911_s21, %s1081_s21   ;;  %s862_s20 = sphi %s909_s20, %s1080_s20   ;;  %s858_s19 = sphi %s907_s19, %s1079_s19   ;;  %s854_s18 = sphi %s905_s18, %s1078_s18   ;;  %s176_s24 = int_to_ptr.hbm [resolvable:$true] %s175_s24 }
   0x8   : > { %p534_p0 = scmp.ge.s32.totalorder %s866_s21, 1  ;;  %p44_p1 = scmp.eq.s32.totalorder %s929_s25, 0 }
   0x9   : > { %p164_p2 = scmp.lt.s32.totalorder %s866_s21, 3  ;;  %s868_s27 = smov [#allocation5]  }
   0xa   : > { %s177_s28 = sshll.u32 %s868_s27, 4  ;;  %s190_s6 = sshll.u32 %s1067_s2, 4  ;;  %s178_s28 = int_to_ptr.vmem [resolvable:$true] %s177_s28  ;;  %s191_s6 = int_to_ptr.hbm [resolvable:$true] %s190_s6 }
   0xb   : > { %p934_p3 = pnand %p534_p0, %p164_p2  ;;  %s201_s10 = sshll.u32 %s1068_s3, 4  ;;  %s202_s10 = int_to_ptr.hbm [resolvable:$true] %s201_s10 }
   0xc   : > { %s869_s11 = smov [#allocation7]   ;;  %s870_s13 = smov 64  }
   0xd   : > { %p606_p4 = pneg %p934_p3  ;;  %s192_s12 = sshll.u32 %s869_s11, 4  ;;  %s193_s12 = int_to_ptr.vmem [resolvable:$true] %s192_s12 }
   0xe   : > { %s871_s14 = smov 4   ;;  %s872_s15 = smov [#allocation8]  }
   0xf   : > { %p946_p6 = pnand %p606_p4, %p44_p1  ;;  %s203_s16 = sshll.u32 %s872_s15, 4  ;;  %s204_s16 = int_to_ptr.vmem [resolvable:$true] %s203_s16 }
  0x10   : > { %s873_s17 = smov 192   ;;  %s874_s22 = smov 12  }
  0x11   : > { %609 = dma.hbm_to_vmem [thread:$0]  (!%p946_p6), %s176_s24, 128, %s178_s28, [#allocation6], %s870_s13, %s870_s13, %s871_s14  }
  0x12   : > { %612 = dma.hbm_to_vmem [thread:$0]  (!%p946_p6), %s191_s6, 16, %s193_s12, [#allocation6]  }
  0x13   : > { %615 = dma.hbm_to_vmem [thread:$0]  (!%p946_p6), %s202_s10, 768, %s204_s16, [#allocation9], %s873_s17, %s873_s17, %s874_s22  }
  0x14   : > { %s533_s23 = sadd.s32 4294967294, %s866_s21   ;;  %s961_s24 = sadd.s32 1, %s866_s21  }
  0x15   : > { %s30_s27 = sadd.s32 1, %s862_s20  ;;  %s27_s28 = ssub.s32 %s866_s21, %s961_s24 }
  0x16   : > { %p37_p7 = scmp.ne.s32.totalorder %s862_s20, %s858_s19  ;;  %p28_p8 = scmp.eq.s32.totalorder %s27_s28, 0 }
  0x17   : > { %p38_p9 = scmp.eq.s32.totalorder %s866_s21, 0  ;;  %p43_p10 = scmp.ne.s32.totalorder %s858_s19, %s854_s18 }
  0x18   : > { %p151_p11 = scmp.eq.s32.totalorder %s929_s25, 1  ;;  %p157_p0 = scmp.eq.s32.totalorder %s533_s23, 1 }
  0x19   : > { %s973_s29 = scalar_select %p28_p8, %s862_s20, %s30_s27  }
  0x1a   : > { %p977_p12 = por %p44_p1, %p43_p10  ;;  %p981_p13 = por %p151_p11, %p37_p7 }
  0x1b   : > { %p39_p2 = por %p38_p9, %p37_p7  ;;  %s220_s7 = sand.u32 1, %s862_s20  }
  0x1c   : > { %p986_p4 = por %p157_p0, %p43_p10  ;;  %p627_p6 = scmp.lt.s32.totalorder %s866_s21, 2 }
  0x1d   : > { %s539_s9 = sshll.u32 %s220_s7, 2  ;;  %s540_s10 = sshll.u32 %s866_s21, 2 }
  0x1e   : > { %s228_s13 = scalar_lea.hbm %s1065_s0, %s540_s10  ;;  %s224_s15 = scalar_lea.vmem [#allocation2], %s539_s9 }
  0x1f   : > { %s230_s14 = sshll.u32 %s228_s13, 4  ;;  %s232_s16 = sshll.u32 %s224_s15, 4  ;;  %s231_s14 = int_to_ptr.hbm [resolvable:$true] %s230_s14  ;;  %s233_s16 = int_to_ptr.vmem [resolvable:$true] %s232_s16 }
  0x20   : > { %p995_p8 = pnand %p627_p6, %p39_p2  ;;  %s221_s22 = scalar_lea.sflag [#allocation3], %s220_s7 }
  0x21   : > { %s762_s23 = sshra.s32 %s231_s14, 4  ;;  %s769_s9 = scalar_lea.hbm %s1065_s0, 8  ;;  %s763_s23 = int_to_ptr.hbm [resolvable:$true] %s762_s23 }
  0x22   : > { %s764_s27 = scalar_lea.hbm %s763_s23, 4  ;;  %p766_p9 = pneg %p995_p8 }
  0x23   : > { %p765_p7 = scmp.ne.s32.totalorder %s763_s23, %s764_s27  ;;  %p770_p0 = scmp.lt.s32.totalorder %s763_s23, %s1065_s0 }
  0x24   : > { %p771_p2 = scmp.lt.s32.totalorder %s769_s9, %s764_s27 }
  0x25   : > { %p767_p10 = pnand %p766_p9, %p765_p7 }
  0x26   : > { %p772_p6 = por %p771_p2, %p770_p0 }
  0x27   : > { %p768_p11 = pneg %p767_p10 }
  0x29   : > { %p773_p5 = pnand %p772_p6, %p768_p11 }
  0x2b   : > { %776 = shalt.err (!%p773_p5)
}
  0x2c   : > { %619 = dma.hbm_to_vmem [thread:$0]  (!%p995_p8), %s231_s14, 64, %s233_s16, %s221_s22  }
  0x2d   : > { %241 = sbr.rel (%p934_p3) target bundleno = 332 (0x14c), region = 40  ;;  %s1012_s7 = sand.u32 (!%p934_p3), 1, %s858_s19  }
  0x2e   : > { %s542_s13 = sshll.u32 (!%p934_p3), %s1012_s7, 2  ;;  %s244_s15 = scalar_lea.sflag (!%p934_p3), [#allocation3], %s1012_s7 }
  0x2f   : > { %s247_s28 = scalar_lea.vmem (!%p934_p3), [#allocation2], %s542_s13 }
  0x32   : > { %837 = dma.done.wait (%p977_p12), %s244_s15, 64  }
  0x33   : > { %839 = vsyncadd (%p977_p12), %s244_s15, 4294967232 }
  0x34   : > { %841 = dma.done.wait (%p44_p1), [#allocation6], 144  }
  0x35   : > { %843 = vsyncadd (%p44_p1), [#allocation6], 4294967152 }
  0x36   : > { %845 = dma.done.wait (%p44_p1), [#allocation9], 768  }
  0x37   : > { %847 = vsyncadd (%p44_p1), [#allocation9], 4294966528  ;;  %v581_v0 = vld [vmem:[#allocation5] sm:$0xff]  ;;  %v291_v1 = vld [vmem:[%s247_s28] sm:$0xf]  ;;  %vm304_vm0 = vcmask 130048  }
  0x38   : > { %315 = vmatpush.bf16.msra.mxu0 %v581_v0  ;;  %v565_v2 = vld [vmem:[#allocation8 + $0x18] sm:$0xf]  ;;  %v586_v3 = vld [vmem:[#allocation8 + $0x20] sm:$0xf0]  ;;  %v585_v4 = vld [vmem:[#allocation8 + $0x1c] sm:$0xf] }
  0x39   : > { %v566_v5 = vor.u32 %v586_v3, %v565_v2  ;;  %v567_v6 = vld [vmem:[#allocation8 + $0x24] sm:$0xf0]  ;;  %v573_v7 = vld [vmem:[#allocation8 + $0x20] sm:$0xf]  ;;  %v587_v8 = vld [vmem:[#allocation8 + $0x28] sm:$0xf0] }
  0x3a   : > { %v570_v9 = vor.u32 %v585_v4, %v567_v6  ;;  %v574_v10 = vor.u32 %v587_v8, %v573_v7  ;;  %v553_v11 = vld [vmem:[#allocation8] sm:$0xf]  ;;  %v583_v12 = vld [vmem:[#allocation8 + $0x8] sm:$0xf0]  ;;  %v582_v13 = vld [vmem:[#allocation8 + $0x4] sm:$0xf] }
  0x3b   : > { %550 = vmatmul.msk.bf16.vlgmr.msra.gmra.mxu0 %vm304_vm0, %v291_v1  ;;  %381 = vmatpush.bf16.msra.mxu1 %v566_v5  ;;  %v554_v14 = vor.u32 %v583_v12, %v553_v11  ;;  %v555_v15 = vld [vmem:[#allocation8 + $0xc] sm:$0xf0]  ;;  %v561_v16 = vld [vmem:[#allocation8 + $0x8] sm:$0xf]  ;;  %v584_v17 = vld [vmem:[#allocation8 + $0x10] sm:$0xf0] }
  0x3c   : > { %394 = vmatpush.bf16.msra.mxu2 %v570_v9  ;;  %407 = vmatpush.bf16.msra.mxu3 %v574_v10  ;;  %v558_v18 = vor.u32 %v582_v13, %v555_v15  ;;  %v562_v19 = vor.u32 %v584_v17, %v561_v16  ;;  %v671_v20 = vld [vmem:[#allocation7] ss:$0 sm:$0xff]  ;;  %vm371_vm1 = vcmask 261120   ;;  %v331_v26 = vld [vmem:[%s1069_s4] sm:$0x7]  ;;  %s588_s14 = smul.u32 24, %s1012_s7 }
  0x3d   : > { %v333_v27 = vperm.slane %v331_v26, 0  ;;  %s589_s16 = smul.u32 24, %s929_s25  ;;  %v334_v30 = vperm.slane %v331_v26, 1  ;;  %v335_v31 = vperm.slane %v331_v26, 2  ;;  %s418_s25 = scalar_lea.sflag [#allocation4], %s1012_s7 }
  0x3e   : > { %s289_s27 = scalar_lea.vmem [#allocation10], %s588_s14  ;;  %s812_s28 = scalar_lea.hbm %s1070_s5, 48 }
  0x3f   : > { %382 = vmatpush.bf16.msra.mxu1 %v554_v14  ;;  %s429_s23 = scalar_lea.hbm %s1070_s5, %s589_s16  ;;  %s431_s10 = sshll.u32 %s289_s27, 4  ;;  %s432_s10 = int_to_ptr.vmem [resolvable:$true] %s431_s10 }
  0x40   : > { %395 = vmatpush.bf16.msra.mxu2 %v558_v18  ;;  %408 = vmatpush.bf16.msra.mxu3 %v562_v19  ;;  %s433_s9 = sshll.u32 %s429_s23, 4  ;;  %s434_s9 = int_to_ptr.hbm [resolvable:$true] %s433_s9 }
  0x41   : > { %s806_s11 = sshra.s32 %s434_s9, 4  ;;  %s807_s11 = int_to_ptr.hbm [resolvable:$true] %s806_s11 }
  0x42   : > { %s808_s12 = scalar_lea.hbm %s807_s11, 24  ;;  %p813_p12 = scmp.lt.s32.totalorder %s807_s11, %s1070_s5 }
  0x43   : > { %p809_p1 = scmp.ne.s32.totalorder %s807_s11, %s808_s12  ;;  %p814_p8 = scmp.lt.s32.totalorder %s812_s28, %s808_s12 }
  0x45   : > { %p810_p3 = pnand %p809_p1, %p981_p13  ;;  %p815_p7 = por %p814_p8, %p813_p12 }
  0x47   : > { %p811_p5 = pneg %p810_p3 }
  0x49   : > { %p816_p9 = pnand %p815_p7, %p811_p5 }
  0xb8   : > { %v317_v21 = vpop.f32.mrf.mxu0 }
  0xb9   : > { %v318_v22 = vadd.f32 %v671_v20, %v317_v21 }
  0xbb   : > { %v321_v23 = vmax.f32 %v318_v22, 0.0 }
  0xbd   : > { %v322_v24 = vpack.c.bf16 %v321_v23, %v321_v23 }
  0xbf   : > { %575 = vmatmul.msk.bf16.vlgmr.msra.gmra.mxu1 %vm371_vm1, %v322_v24  ;;  %576 = vmatmul.msk.bf16.vlgmr.msra.gmra.mxu2 %vm371_vm1, %v322_v24 }
  0xc0   : > { %577 = vmatmul.msk.bf16.vlgmr.msra.gmra.mxu3 %vm371_vm1, %v322_v24  ;;  %v319_v25 = vpop.f32.mrf.mxu0 }
 0x13c   : > { %v384_v28 = vpop.f32.mrf.mxu1 }
 0x13d   : > { %v385_v29 = vadd.f32 %v384_v28, %v333_v27 }
 0x13f   : > { %414 = vst [vmem:[%s289_s27] sm:$0xff] %v385_v29 }
 0x142   : > { %v397_v32 = vpop.f32.mrf.mxu2 }
 0x143   : > { %v398_v33 = vadd.f32 %v397_v32, %v334_v30  ;;  %v410_v34 = vpop.f32.mrf.mxu3 }
 0x144   : > { %v411_v35 = vadd.f32 %v410_v34, %v335_v31  ;;  %v386_v36 = vpop.f32.mrf.mxu1 }
 0x145   : > { %415 = vst [vmem:[%s289_s27 + $0x8] sm:$0xff] %v398_v33 }
 0x146   : > { %416 = vst [vmem:[%s289_s27 + $0x10] sm:$0xff] %v411_v35 }
 0x147   : > { %819 = shalt.err (!%p816_p9)
}
 0x148   : > { %604 = dma.vmem_to_hbm [thread:$0]  (%p981_p13), %s432_s10, 384, %s434_s9, %s418_s25  }
 0x14a   : > { %v399_v37 = vpop.f32.mrf.mxu2 }
 0x14b   : > { %v412_v38 = vpop.f32.mrf.mxu3 }
 0x14c PF: > { %s445_s7 = sand.u32 1, %s854_s18   ;;  %p1077_p10 = scmp.ge.s32.totalorder %s866_s21, 2 }
 0x14d   : > { %s446_s14 = scalar_lea.sflag [#allocation4], %s445_s7 }
 0x14e   : > { %p621_p11 = pnand %p1077_p10, %p986_p4 }
 0x150   : > { %p622_p0 = pneg %p621_p11 }
 0x152   : > { %849 = dma.done.wait (%p622_p0), %s446_s14, 384  }
 0x153   : > { %851 = vsyncadd (%p622_p0), %s446_s14, 4294966912  ;;  %p20_p13 = scmp.ge.s32.totalorder %s961_s24, 4   ;;  %s1078_s18 = smov %s858_s19 }
 0x154   : > { %s1079_s19 = smov %s862_s20  ;;  %s1080_s20 = smov %s973_s29 }
 0x155   : > { %s1081_s21 = smov %s961_s24  ;;  %22 = sbr.rel (!%p20_p13) target bundleno = 7 (0x7), region = 97 }
 0x15a   :  { %452 = vsyncpa [#allocation3], 1 }
 0x15b   :  { %454 = vsyncpa [#allocation3 + $0x1], 1 }
 0x15c   :  { %455 = vsyncpa [#allocation6], 1 }
 0x15d   :  { %456 = vsyncpa [#allocation9], 1 }
 0x15e   :  { %457 = vsyncpa [#allocation4], 1 }
 0x15f   :  { %459 = vsyncpa [#allocation4 + $0x1], 1 }

// kernel: tpu_custom_call.1
= control target key start
LH: loop header
LB: loop body
LE: loop exit
PB: predicated region body
PF: predicated region fallthrough
CT: control target
= control target key end

     0   :  { %10 = vsyncpa [#allocation3], 0  ;;  %s1065_s0 = inlined_call_operand.hbm [shape: bf16[16,16], index: 0, kind: input, shape index: {}]   ;;  %s1066_s1 = inlined_call_operand.hbm [shape: bf16[16,32], index: 1, kind: input, shape index: {}]   ;;  %s1067_s2 = inlined_call_operand.hbm [shape: f32[1,32], index: 2, kind: input, shape index: {}]   ;;  %s1068_s3 = inlined_call_operand.hbm [shape: bf16[32,384], index: 3, kind: input, shape index: {}]   ;;  %s1069_s4 = inlined_call_operand.vmem [shape: f32[1,384], index: 4, kind: input, shape index: {}]   ;;  %s1070_s5 = inlined_call_operand.hbm [shape: f32[16,384], index: 5, kind: output, shape index: {}]  }
   0x1   :  { %12 = vsyncpa [#allocation3 + $0x1], 0 }
   0x2   :  { %13 = vsyncpa [#allocation6], 0 }
   0x3   :  { %14 = vsyncpa [#allocation9], 0 }
   0x4   :  { %15 = vsyncpa [#allocation4], 0 }
   0x5   :  { %17 = vsyncpa [#allocation4 + $0x1], 0  ;;  %s905_s18 = smov 0   ;;  %s907_s19 = smov 0  }
   0x6   :  { %s909_s20 = smov 0   ;;  %s911_s21 = smov 0  }
   0x7 LB: > { %s175_s24 = sshll.u32 %s1066_s1, 4  ;;  %s929_s25 = sadd.s32 4294967295, %s866_s21   ;;  %s866_s21 = sphi %s911_s21, %s1081_s21   ;;  %s862_s20 = sphi %s909_s20, %s1080_s20   ;;  %s858_s19 = sphi %s907_s19, %s1079_s19   ;;  %s854_s18 = sphi %s905_s18, %s1078_s18   ;;  %s176_s24 = int_to_ptr.hbm [resolvable:$true] %s175_s24 }
   0x8   : > { %p534_p0 = scmp.ge.s32.totalorder %s866_s21, 1  ;;  %p44_p1 = scmp.eq.s32.totalorder %s929_s25, 0 }
   0x9   : > { %p164_p2 = scmp.lt.s32.totalorder %s866_s21, 3  ;;  %s868_s27 = smov [#allocation5]  }
   0xa   : > { %s177_s28 = sshll.u32 %s868_s27, 4  ;;  %s190_s6 = sshll.u32 %s1067_s2, 4  ;;  %s178_s28 = int_to_ptr.vmem [resolvable:$true] %s177_s28  ;;  %s191_s6 = int_to_ptr.hbm [resolvable:$true] %s190_s6 }
   0xb   : > { %p934_p3 = pnand %p534_p0, %p164_p2  ;;  %s201_s10 = sshll.u32 %s1068_s3, 4  ;;  %s202_s10 = int_to_ptr.hbm [resolvable:$true] %s201_s10 }
   0xc   : > { %s869_s11 = smov [#allocation7]   ;;  %s870_s13 = smov 64  }
   0xd   : > { %p606_p4 = pneg %p934_p3  ;;  %s192_s12 = sshll.u32 %s869_s11, 4  ;;  %s193_s12 = int_to_ptr.vmem [resolvable:$true] %s192_s12 }
   0xe   : > { %s871_s14 = smov 4   ;;  %s872_s15 = smov [#allocation8]  }
   0xf   : > { %p946_p6 = pnand %p606_p4, %p44_p1  ;;  %s203_s16 = sshll.u32 %s872_s15, 4  ;;  %s204_s16 = int_to_ptr.vmem [resolvable:$true] %s203_s16 }
  0x10   : > { %s873_s17 = smov 192   ;;  %s874_s22 = smov 12  }
  0x11   : > { %609 = dma.hbm_to_vmem [thread:$0]  (!%p946_p6), %s176_s24, 128, %s178_s28, [#allocation6], %s870_s13, %s870_s13, %s871_s14  }
  0x12   : > { %612 = dma.hbm_to_vmem [thread:$0]  (!%p946_p6), %s191_s6, 16, %s193_s12, [#allocation6]  }
  0x13   : > { %615 = dma.hbm_to_vmem [thread:$0]  (!%p946_p6), %s202_s10, 768, %s204_s16, [#allocation9], %s873_s17, %s873_s17, %s874_s22  }
  0x14   : > { %s533_s23 = sadd.s32 4294967294, %s866_s21   ;;  %s961_s24 = sadd.s32 1, %s866_s21  }
  0x15   : > { %s30_s27 = sadd.s32 1, %s862_s20  ;;  %s27_s28 = ssub.s32 %s866_s21, %s961_s24 }
  0x16   : > { %p37_p7 = scmp.ne.s32.totalorder %s862_s20, %s858_s19  ;;  %p28_p8 = scmp.eq.s32.totalorder %s27_s28, 0 }
  0x17   : > { %p38_p9 = scmp.eq.s32.totalorder %s866_s21, 0  ;;  %p43_p10 = scmp.ne.s32.totalorder %s858_s19, %s854_s18 }
  0x18   : > { %p151_p11 = scmp.eq.s32.totalorder %s929_s25, 1  ;;  %p157_p0 = scmp.eq.s32.totalorder %s533_s23, 1 }
  0x19   : > { %s973_s29 = scalar_select %p28_p8, %s862_s20, %s30_s27  }
  0x1a   : > { %p977_p12 = por %p44_p1, %p43_p10  ;;  %p981_p13 = por %p151_p11, %p37_p7 }
  0x1b   : > { %p39_p2 = por %p38_p9, %p37_p7  ;;  %s220_s7 = sand.u32 1, %s862_s20  }
  0x1c   : > { %p986_p4 = por %p157_p0, %p43_p10  ;;  %p627_p6 = scmp.lt.s32.totalorder %s866_s21, 2 }
  0x1d   : > { %s539_s9 = sshll.u32 %s220_s7, 2  ;;  %s540_s10 = sshll.u32 %s866_s21, 2 }
  0x1e   : > { %s228_s13 = scalar_lea.hbm %s1065_s0, %s540_s10  ;;  %s224_s15 = scalar_lea.vmem [#allocation2], %s539_s9 }
  0x1f   : > { %s230_s14 = sshll.u32 %s228_s13, 4  ;;  %s232_s16 = sshll.u32 %s224_s15, 4  ;;  %s231_s14 = int_to_ptr.hbm [resolvable:$true] %s230_s14  ;;  %s233_s16 = int_to_ptr.vmem [resolvable:$true] %s232_s16 }
  0x20   : > { %p995_p8 = pnand %p627_p6, %p39_p2  ;;  %s221_s22 = scalar_lea.sflag [#allocation3], %s220_s7 }
  0x21   : > { %s762_s23 = sshra.s32 %s231_s14, 4  ;;  %s769_s9 = scalar_lea.hbm %s1065_s0, 8  ;;  %s763_s23 = int_to_ptr.hbm [resolvable:$true] %s762_s23 }
  0x22   : > { %s764_s27 = scalar_lea.hbm %s763_s23, 4  ;;  %p766_p9 = pneg %p995_p8 }
  0x23   : > { %p765_p7 = scmp.ne.s32.totalorder %s763_s23, %s764_s27  ;;  %p770_p0 = scmp.lt.s32.totalorder %s763_s23, %s1065_s0 }
  0x24   : > { %p771_p2 = scmp.lt.s32.totalorder %s769_s9, %s764_s27 }
  0x25   : > { %p767_p10 = pnand %p766_p9, %p765_p7 }
  0x26   : > { %p772_p6 = por %p771_p2, %p770_p0 }
  0x27   : > { %p768_p11 = pneg %p767_p10 }
  0x29   : > { %p773_p5 = pnand %p772_p6, %p768_p11 }
  0x2b   : > { %776 = shalt.err (!%p773_p5)
}
  0x2c   : > { %619 = dma.hbm_to_vmem [thread:$0]  (!%p995_p8), %s231_s14, 64, %s233_s16, %s221_s22  }
  0x2d   : > { %241 = sbr.rel (%p934_p3) target bundleno = 332 (0x14c), region = 40  ;;  %s1012_s7 = sand.u32 (!%p934_p3), 1, %s858_s19  }
  0x2e   : > { %s542_s13 = sshll.u32 (!%p934_p3), %s1012_s7, 2  ;;  %s244_s15 = scalar_lea.sflag (!%p934_p3), [#allocation3], %s1012_s7 }
  0x2f   : > { %s247_s28 = scalar_lea.vmem (!%p934_p3), [#allocation2], %s542_s13 }
  0x32   : > { %837 = dma.done.wait (%p977_p12), %s244_s15, 64  }
  0x33   : > { %839 = vsyncadd (%p977_p12), %s244_s15, 4294967232 }
  0x34   : > { %841 = dma.done.wait (%p44_p1), [#allocation6], 144  }
  0x35   : > { %843 = vsyncadd (%p44_p1), [#allocation6], 4294967152 }
  0x36   : > { %845 = dma.done.wait (%p44_p1), [#allocation9], 768  }
  0x37   : > { %847 = vsyncadd (%p44_p1), [#allocation9], 4294966528  ;;  %v581_v0 = vld [vmem:[#allocation5] sm:$0xff]  ;;  %v291_v1 = vld [vmem:[%s247_s28] sm:$0xf]  ;;  %vm304_vm0 = vcmask 130048  }
  0x38   : > { %315 = vmatpush.bf16.msra.mxu0 %v581_v0  ;;  %v565_v2 = vld [vmem:[#allocation8 + $0x18] sm:$0xf]  ;;  %v586_v3 = vld [vmem:[#allocation8 + $0x20] sm:$0xf0]  ;;  %v585_v4 = vld [vmem:[#allocation8 + $0x1c] sm:$0xf] }
  0x39   : > { %v566_v5 = vor.u32 %v586_v3, %v565_v2  ;;  %v567_v6 = vld [vmem:[#allocation8 + $0x24] sm:$0xf0]  ;;  %v573_v7 = vld [vmem:[#allocation8 + $0x20] sm:$0xf]  ;;  %v587_v8 = vld [vmem:[#allocation8 + $0x28] sm:$0xf0] }
  0x3a   : > { %v570_v9 = vor.u32 %v585_v4, %v567_v6  ;;  %v574_v10 = vor.u32 %v587_v8, %v573_v7  ;;  %v553_v11 = vld [vmem:[#allocation8] sm:$0xf]  ;;  %v583_v12 = vld [vmem:[#allocation8 + $0x8] sm:$0xf0]  ;;  %v582_v13 = vld [vmem:[#allocation8 + $0x4] sm:$0xf] }
  0x3b   : > { %550 = vmatmul.msk.bf16.vlgmr.msra.gmra.mxu0 %vm304_vm0, %v291_v1  ;;  %381 = vmatpush.bf16.msra.mxu1 %v566_v5  ;;  %v554_v14 = vor.u32 %v583_v12, %v553_v11  ;;  %v555_v15 = vld [vmem:[#allocation8 + $0xc] sm:$0xf0]  ;;  %v561_v16 = vld [vmem:[#allocation8 + $0x8] sm:$0xf]  ;;  %v584_v17 = vld [vmem:[#allocation8 + $0x10] sm:$0xf0] }
  0x3c   : > { %394 = vmatpush.bf16.msra.mxu2 %v570_v9  ;;  %407 = vmatpush.bf16.msra.mxu3 %v574_v10  ;;  %v558_v18 = vor.u32 %v582_v13, %v555_v15  ;;  %v562_v19 = vor.u32 %v584_v17, %v561_v16  ;;  %v671_v20 = vld [vmem:[#allocation7] ss:$0 sm:$0xff]  ;;  %vm371_vm1 = vcmask 261120   ;;  %v331_v26 = vld [vmem:[%s1069_s4] sm:$0x7]  ;;  %s588_s14 = smul.u32 24, %s1012_s7 }
  0x3d   : > { %v333_v27 = vperm.slane %v331_v26, 0  ;;  %s589_s16 = smul.u32 24, %s929_s25  ;;  %v334_v30 = vperm.slane %v331_v26, 1  ;;  %v335_v31 = vperm.slane %v331_v26, 2  ;;  %s418_s25 = scalar_lea.sflag [#allocation4], %s1012_s7 }
  0x3e   : > { %s289_s27 = scalar_lea.vmem [#allocation10], %s588_s14  ;;  %s812_s28 = scalar_lea.hbm %s1070_s5, 48 }
  0x3f   : > { %382 = vmatpush.bf16.msra.mxu1 %v554_v14  ;;  %s429_s23 = scalar_lea.hbm %s1070_s5, %s589_s16  ;;  %s431_s10 = sshll.u32 %s289_s27, 4  ;;  %s432_s10 = int_to_ptr.vmem [resolvable:$true] %s431_s10 }
  0x40   : > { %395 = vmatpush.bf16.msra.mxu2 %v558_v18  ;;  %408 = vmatpush.bf16.msra.mxu3 %v562_v19  ;;  %s433_s9 = sshll.u32 %s429_s23, 4  ;;  %s434_s9 = int_to_ptr.hbm [resolvable:$true] %s433_s9 }
  0x41   : > { %s806_s11 = sshra.s32 %s434_s9, 4  ;;  %s807_s11 = int_to_ptr.hbm [resolvable:$true] %s806_s11 }
  0x42   : > { %s808_s12 = scalar_lea.hbm %s807_s11, 24  ;;  %p813_p12 = scmp.lt.s32.totalorder %s807_s11, %s1070_s5 }
  0x43   : > { %p809_p1 = scmp.ne.s32.totalorder %s807_s11, %s808_s12  ;;  %p814_p8 = scmp.lt.s32.totalorder %s812_s28, %s808_s12 }
  0x45   : > { %p810_p3 = pnand %p809_p1, %p981_p13  ;;  %p815_p7 = por %p814_p8, %p813_p12 }
  0x47   : > { %p811_p5 = pneg %p810_p3 }
  0x49   : > { %p816_p9 = pnand %p815_p7, %p811_p5 }
  0xb8   : > { %v317_v21 = vpop.f32.mrf.mxu0 }
  0xb9   : > { %v318_v22 = vadd.f32 %v671_v20, %v317_v21 }
  0xbb   : > { %v321_v23 = vmax.f32 %v318_v22, 0.0 }
  0xbd   : > { %v322_v24 = vpack.c.bf16 %v321_v23, %v321_v23 }
  0xbf   : > { %575 = vmatmul.msk.bf16.vlgmr.msra.gmra.mxu1 %vm371_vm1, %v322_v24  ;;  %576 = vmatmul.msk.bf16.vlgmr.msra.gmra.mxu2 %vm371_vm1, %v322_v24 }
  0xc0   : > { %577 = vmatmul.msk.bf16.vlgmr.msra.gmra.mxu3 %vm371_vm1, %v322_v24  ;;  %v319_v25 = vpop.f32.mrf.mxu0 }
 0x13c   : > { %v384_v28 = vpop.f32.mrf.mxu1 }
 0x13d   : > { %v385_v29 = vadd.f32 %v384_v28, %v333_v27 }
 0x13f   : > { %414 = vst [vmem:[%s289_s27] sm:$0xff] %v385_v29 }
 0x142   : > { %v397_v32 = vpop.f32.mrf.mxu2 }
 0x143   : > { %v398_v33 = vadd.f32 %v397_v32, %v334_v30  ;;  %v410_v34 = vpop.f32.mrf.mxu3 }
 0x144   : > { %v411_v35 = vadd.f32 %v410_v34, %v335_v31  ;;  %v386_v36 = vpop.f32.mrf.mxu1 }
 0x145   : > { %415 = vst [vmem:[%s289_s27 + $0x8] sm:$0xff] %v398_v33 }
 0x146   : > { %416 = vst [vmem:[%s289_s27 + $0x10] sm:$0xff] %v411_v35 }
 0x147   : > { %819 = shalt.err (!%p816_p9)
}
 0x148   : > { %604 = dma.vmem_to_hbm [thread:$0]  (%p981_p13), %s432_s10, 384, %s434_s9, %s418_s25  }
 0x14a   : > { %v399_v37 = vpop.f32.mrf.mxu2 }
 0x14b   : > { %v412_v38 = vpop.f32.mrf.mxu3 }
 0x14c PF: > { %s445_s7 = sand.u32 1, %s854_s18   ;;  %p1077_p10 = scmp.ge.s32.totalorder %s866_s21, 2 }
 0x14d   : > { %s446_s14 = scalar_lea.sflag [#allocation4], %s445_s7 }
 0x14e   : > { %p621_p11 = pnand %p1077_p10, %p986_p4 }
 0x150   : > { %p622_p0 = pneg %p621_p11 }
 0x152   : > { %849 = dma.done.wait (%p622_p0), %s446_s14, 384  }
 0x153   : > { %851 = vsyncadd (%p622_p0), %s446_s14, 4294966912  ;;  %p20_p13 = scmp.ge.s32.totalorder %s961_s24, 4   ;;  %s1078_s18 = smov %s858_s19 }
 0x154   : > { %s1079_s19 = smov %s862_s20  ;;  %s1080_s20 = smov %s973_s29 }
 0x155   : > { %s1081_s21 = smov %s961_s24  ;;  %22 = sbr.rel (!%p20_p13) target bundleno = 7 (0x7), region = 97 }
 0x15a   :  { %452 = vsyncpa [#allocation3], 1 }
 0x15b   :  { %454 = vsyncpa [#allocation3 + $0x1], 1 }
 0x15c   :  { %455 = vsyncpa [#allocation6], 1 }
 0x15d   :  { %456 = vsyncpa [#allocation9], 1 }
 0x15e   :  { %457 = vsyncpa [#allocation4], 1 }
 0x15f   :  { %459 = vsyncpa [#allocation4 + $0x1], 1 }

</bundles_post_ra>
